<compile_context>
chip_gen: v6e
topology: v6e:2x2x1
jax: 0.10.0
libtpu: 0.0.40
codegen_flags: <defaults>
</compile_context>

<pallas_src>
import functools

import jax
import jax.numpy as jnp
from jax import lax
from jax.experimental import pallas as pl
from jax.experimental.pallas import tpu as pltpu


def _spd_dropout_kernel(x_ref, mrow_ref, mcol_ref, o_ref, *, scale, epsilon):
    """Fused block op: out = scale * (m m^T) * x + epsilon * I for TB matrices at once."""
    x = x_ref[...]                         # (TB, N, N)
    m_row = mrow_ref[...]                  # (TB, 1, N)  keep-mask, broadcasts over rows
    m_col = mcol_ref[...]                  # (TB, N, 1)  keep-mask, broadcasts over cols
    tb, n, _ = x.shape
    row = lax.broadcasted_iota(jnp.int32, (tb, n, n), 1)
    col = lax.broadcasted_iota(jnp.int32, (tb, n, n), 2)
    eye = (row == col).astype(x.dtype)     # identity built in-kernel (no HBM traffic)
    o_ref[...] = (scale * (x * m_row * m_col) + epsilon * eye).astype(o_ref.dtype)


def spd_dropout(x, key, *, drop_prob=0.5, use_scaling=True, epsilon=1e-5,
                training=True, block_b=8):
    """x: (B, N, N) float32 batch of SPD matrices.  Returns the dropped-out batch."""
    if not training:
        return x

    B, N, _ = x.shape
    x = x.astype(jnp.float32)

    # Randomness lives in glue code (mirrors the torch/np RNG calls of the module):
    # one Bernoulli keep decision per (batch, channel).
    keep = jax.random.bernoulli(key, 1.0 - drop_prob, (B, N)).astype(jnp.float32)
    m_row = keep.reshape(B, 1, N)
    m_col = keep.reshape(B, N, 1)
    scale = (1.0 / (1.0 - drop_prob)) if use_scaling else 1.0

    # TB batching: largest divisor of B that is <= block_b.
    tb = min(block_b, B)
    while B % tb:
        tb -= 1
    grid = (B // tb,)

    flops = 3 * B * N * N                                   # 2 muls + scale/add per elem
    bytes_accessed = 2 * B * N * N * 4 + 2 * B * N * 4      # x in, out, two mask views

    kernel = functools.partial(_spd_dropout_kernel, scale=scale, epsilon=epsilon)
    out = pl.pallas_call(
        kernel,
        out_shape=jax.ShapeDtypeStruct((B, N, N), jnp.float32),
        grid=grid,
        in_specs=[
            pl.BlockSpec((tb, N, N), lambda i: (i, 0, 0)),   # x block
            pl.BlockSpec((tb, 1, N), lambda i: (i, 0, 0)),   # row keep-mask
            pl.BlockSpec((tb, N, 1), lambda i: (i, 0, 0)),   # col keep-mask
        ],
        out_specs=pl.BlockSpec((tb, N, N), lambda i: (i, 0, 0)),
        compiler_params=pltpu.CompilerParams(
            dimension_semantics=("parallel",)),              # independent batch blocks
        cost_estimate=pl.CostEstimate(
            flops=flops, transcendentals=0, bytes_accessed=bytes_accessed),
    )(x, m_row, m_col)
    return out


if __name__ == "__main__":
    key = jax.random.PRNGKey(0)
    B, N = 8, 16
    drop_prob, use_scaling, epsilon = 0.5, True, 1e-5

    k_x, k_mask = jax.random.split(key)
    a = jax.random.normal(k_x, (B, N, N), dtype=jnp.float32)
    x = jnp.einsum("bij,bkj->bik", a, a) + 0.1 * jnp.eye(N, dtype=jnp.float32)  # SPD batch

    out = spd_dropout(x, k_mask, drop_prob=drop_prob, use_scaling=use_scaling,
                      epsilon=epsilon, training=True, block_b=4)
    out = jax.block_until_ready(out)

    # Pure-JAX reference with the identical mask draw.
    keep = jax.random.bernoulli(k_mask, 1.0 - drop_prob, (B, N)).astype(jnp.float32)
    scale = 1.0 / (1.0 - drop_prob) if use_scaling else 1.0
    ref = scale * (keep[:, :, None] * keep[:, None, :]) * x + epsilon * jnp.eye(
        N, dtype=jnp.float32)

    assert out.shape == (B, N, N)
    assert jnp.allclose(out, ref, atol=1e-6, rtol=1e-6), "mismatch vs reference"

    # Eval mode is the identity (module returns x unchanged when not training).
    out_eval = spd_dropout(x, k_mask, drop_prob=drop_prob, training=False)
    assert jnp.allclose(out_eval, x)

    print("KERNEL_OK")
</pallas_src>

<mosaic_0001>
module attributes {stable_mosaic.version = 11 : i64} {
  func.func @_spd_dropout_kernel(%arg0: i32, %arg1: memref<4x16x16xf32, #tpu.memory_space<vmem>>, %arg2: memref<4x1x16xf32, #tpu.memory_space<vmem>>, %arg3: memref<4x16x1xf32, #tpu.memory_space<vmem>>, %arg4: memref<4x16x16xf32, #tpu.memory_space<vmem>>) attributes {dimension_semantics = [#tpu.dimension_semantics<parallel>], iteration_bounds = array<i64: 2>, scalar_prefetch = 0 : i64, scratch_operands = 0 : i64, tpu.core_type = #tpu.core_type<tc>, window_params = [{transform_indices = @transform_0, window_bounds = array<i64: 4, 16, 16>}, {transform_indices = @transform_1, window_bounds = array<i64: 4, 1, 16>}, {transform_indices = @transform_2, window_bounds = array<i64: 4, 16, 1>}, {transform_indices = @transform_3, window_bounds = array<i64: 4, 16, 16>}]} {
    %c0 = arith.constant 0 : index
    %c0_0 = arith.constant 0 : index
    %c0_1 = arith.constant 0 : index
    %0 = vector.load %arg1[%c0, %c0_0, %c0_1] : memref<4x16x16xf32, #tpu.memory_space<vmem>>, vector<4x16x16xf32>
    %c0_2 = arith.constant 0 : index
    %c0_3 = arith.constant 0 : index
    %c0_4 = arith.constant 0 : index
    %1 = vector.load %arg2[%c0_2, %c0_3, %c0_4] : memref<4x1x16xf32, #tpu.memory_space<vmem>>, vector<4x1x16xf32>
    %c0_5 = arith.constant 0 : index
    %c0_6 = arith.constant 0 : index
    %c0_7 = arith.constant 0 : index
    %2 = vector.load %arg3[%c0_5, %c0_6, %c0_7] : memref<4x16x1xf32, #tpu.memory_space<vmem>>, vector<4x16x1xf32>
    %3 = tpu.iota {dimensions = array<i32: 1>} : vector<4x16x16xi32>
    %4 = tpu.iota {dimensions = array<i32: 2>} : vector<4x16x16xi32>
    %5 = arith.cmpi eq, %3, %4 : vector<4x16x16xi32>
    %6 = arith.extui %5 : vector<4x16x16xi1> to vector<4x16x16xi32>
    %7 = arith.sitofp %6 : vector<4x16x16xi32> to vector<4x16x16xf32>
    %8 = vector.broadcast %1 : vector<4x1x16xf32> to vector<4x16x16xf32>
    %9 = arith.mulf %0, %8 : vector<4x16x16xf32>
    %10 = vector.broadcast %2 : vector<4x16x1xf32> to vector<4x16x16xf32>
    %11 = arith.mulf %9, %10 : vector<4x16x16xf32>
    %cst = arith.constant 2.000000e+00 : f32
    %12 = vector.broadcast %cst : f32 to vector<4x16x16xf32>
    %13 = arith.mulf %12, %11 : vector<4x16x16xf32>
    %cst_8 = arith.constant 9.99999974E-6 : f32
    %14 = vector.broadcast %cst_8 : f32 to vector<4x16x16xf32>
    %15 = arith.mulf %14, %7 : vector<4x16x16xf32>
    %16 = arith.addf %13, %15 : vector<4x16x16xf32>
    %c0_9 = arith.constant 0 : index
    %c0_10 = arith.constant 0 : index
    %c0_11 = arith.constant 0 : index
    %17 = vector.load %arg4[%c0_9, %c0_10, %c0_11] : memref<4x16x16xf32, #tpu.memory_space<vmem>>, vector<4x16x16xf32>
    tpu.vector_store %arg4[%c0_9, %c0_10, %c0_11], %16 {strides = array<i32>} : memref<4x16x16xf32, #tpu.memory_space<vmem>>, vector<4x16x16xf32>,
    return
  }
  func.func @transform_0(%arg0: i32) -> (i32, i32, i32) {
    %c0_i32 = arith.constant 0 : i32
    %c0_i32_0 = arith.constant 0 : i32
    %c0_i32_1 = arith.constant 0 : i32
    return %arg0, %c0_i32, %c0_i32_0 : i32, i32, i32
  }
  func.func @transform_1(%arg0: i32) -> (i32, i32, i32) {
    %c0_i32 = arith.constant 0 : i32
    %c0_i32_0 = arith.constant 0 : i32
    %c0_i32_1 = arith.constant 0 : i32
    return %arg0, %c0_i32, %c0_i32_0 : i32, i32, i32
  }
  func.func @transform_2(%arg0: i32) -> (i32, i32, i32) {
    %c0_i32 = arith.constant 0 : i32
    %c0_i32_0 = arith.constant 0 : i32
    %c0_i32_1 = arith.constant 0 : i32
    return %arg0, %c0_i32, %c0_i32_0 : i32, i32, i32
  }
  func.func @transform_3(%arg0: i32) -> (i32, i32, i32) {
    %c0_i32 = arith.constant 0 : i32
    %c0_i32_0 = arith.constant 0 : i32
    %c0_i32_1 = arith.constant 0 : i32
    return %arg0, %c0_i32, %c0_i32_0 : i32, i32, i32
  }
}

</mosaic_0001>

<bundles_post_ra>
// kernel: tpu_custom_call.1
= control target key start
LH: loop header
LB: loop body
LE: loop exit
PB: predicated region body
PF: predicated region fallthrough
CT: control target
= control target key end

     0   :  { %8 = vsyncpa [#allocation3], 0  ;;  %s755_s0 = inlined_call_operand.vmem [shape: f32[8,16,16], index: 0, kind: input, shape index: {}]   ;;  %s756_s1 = inlined_call_operand.vmem [shape: f32[8,1,16], index: 1, kind: input, shape index: {}]   ;;  %s757_s2 = inlined_call_operand.vmem [shape: f32[8,16,1], index: 2, kind: input, shape index: {}]   ;;  %s758_s3 = inlined_call_operand.hbm [shape: f32[8,16,16], index: 3, kind: output, shape index: {}]  }
   0x1   :  { %10 = vsyncpa [#allocation3 + $0x1], 0  ;;  %s615_s12 = smov 0   ;;  %s617_s13 = smov 0  }
   0x2   :  { %s619_s14 = smov 0   ;;  %s621_s15 = smov 0  }
   0x3 LB: > { %s636_s16 = sadd.s32 4294967295, %s588_s15   ;;  %s455_s17 = sadd.s32 4294967294, %s588_s15   ;;  %s588_s15 = sphi %s621_s15, %s764_s15   ;;  %s584_s14 = sphi %s619_s14, %s763_s14   ;;  %s580_s13 = sphi %s617_s13, %s762_s13   ;;  %s576_s12 = sphi %s615_s12, %s761_s12  }
   0x4   : > { %s640_s18 = sadd.s32 1, %s588_s15   ;;  %s101_s19 = sadd.s32 1, %s584_s14 }
   0x5   : > { %s98_s20 = ssub.s32 %s588_s15, %s640_s18  ;;  %p111_p0 = scmp.ne.s32.totalorder %s584_s14, %s580_s13 }
   0x6   : > { %p99_p1 = scmp.eq.s32.totalorder %s98_s20, 0  ;;  %p112_p2 = scmp.eq.s32.totalorder %s636_s16, 1 }
   0x7   : > { %p117_p3 = scmp.ne.s32.totalorder %s580_s13, %s576_s12  ;;  %p118_p4 = scmp.eq.s32.totalorder %s455_s17, 1 }
   0x8   : > { %s651_s21 = scalar_select %p99_p1, %s584_s14, %s101_s19  }
   0x9   : > { %p653_p5 = por %p112_p2, %p111_p0  ;;  %p657_p6 = por %p118_p4, %p117_p3 }
   0xa   : > { %p458_p7 = scmp.ge.s32.totalorder %s588_s15, 1  ;;  %p164_p8 = scmp.lt.s32.totalorder %s588_s15, 3 }
   0xc   : > { %p165_p9 = pnand %p458_p7, %p164_p8 }
   0xd   : > { %s460_s24 = sshll.u32 (!%p165_p9), %s636_s16, 2  ;;  %s196_s8 = sand.u32 (!%p165_p9), 1, %s580_s13  }
   0xe   : > { %168 = sbr.rel (%p165_p9) target bundleno = 179 (0xb3), region = 32  ;;  %p200_p10 = scmp.lt.s32.totalorder (!%p165_p9), %s460_s24, 7 }
   0xf   : > { %s459_s9 = sshll.u32 (!%p165_p9), %s196_s8, 6  ;;  %s482_s11 = sshll.u32 (!%p165_p9), %s636_s16, 10 }
  0x10   : > { %s686_s10 = scalar_lea.vmem (!%p165_p9), [#allocation2], %s459_s9  ;;  %s715_s16 = scalar_lea.sflag (!%p165_p9), [#allocation3], %s196_s8 }
  0x11   : > { %s372_s17 = sshll.u32 (!%p165_p9), %s686_s10, 4  ;;  %s592_s26 = smov (!%p165_p9), [#allocation2]   ;;  %s707_s17 = int_to_ptr.vmem [resolvable:$true] %s372_s17 }
  0x12   : > { %s532_s27 = sshll.u32 (!%p165_p9), %s592_s26, 4  ;;  %s533_s27 = int_to_ptr.vmem [resolvable:$false] %s532_s27 }
  0x13   : > { %v590_v0 = vmov 0   ;;  %s766_s24 = smov (!%p200_p10, %s460_s24), 7  ;;  %v239_v29 = vlaneseq  ;;  %v591_v33 = vmov 0.0   ;;  %vm348_vm2 = vcmask 130048   ;;  %p535_p0 = scmp.lt.s32.totalorder %s707_s17, %s533_s27 }
  0x14   : > { %527 = vset.pattern.permute.xlu1 %v590_v0  ;;  %526 = vset.pattern.permute.xlu0 %v590_v0  ;;  %s479_s25 = sshll.u32 %s766_s24, 4  ;;  %s209_s28 = scalar_lea.vmem %s756_s1, %s766_s24 }
  0x15   : > { %s670_s4 = scalar_lea.vmem %s757_s2, %s479_s25  ;;  %s204_s7 = scalar_lea.vmem %s755_s0, %s479_s25  ;;  %v470_v3 = vld [vmem:[%s209_s28 + $0x1] ss:$0 sm:$0xff]  ;;  %v469_v4 = vld [vmem:[%s209_s28] ss:$0 sm:$0xff]  ;;  %v471_v15 = vld [vmem:[%s209_s28 + $0x2] ss:$0 sm:$0xff] }
  0x16   : > { %v233_v1 = vld [vmem:[%s670_s4 + $0x10] sm:$0xff]  ;;  %v231_v2 = vld [vmem:[%s670_s4] sm:$0xff]  ;;  %v234_v5 = vld [vmem:[%s670_s4 + $0x18] sm:$0xff]  ;;  %v240_v30 = vshrl.u32 %v239_v29, 7  ;;  %v243_v31 = vand.u32 127, %v239_v29  ;;  %s705_s24 = scalar_lea.hbm %s758_s3, %s482_s11  ;;  %s528_s25 = scalar_lea.vmem %s707_s17, 1024 }
  0x17   : > { %294 = vperm.xlu1 %527, %v233_v1   ;;  %284 = vperm.xlu0 %526, %v231_v2   ;;  %v232_v6 = vld [vmem:[%s670_s4 + $0x8] sm:$0xff]  ;;  %v221_v7 = vld [vmem:[%s204_s7 + $0x10] sm:$0xff]  ;;  %v219_v9 = vld [vmem:[%s204_s7] sm:$0xff]  ;;  %p529_p11 = scmp.ne.s32.totalorder %s707_s17, %s528_s25 }
  0x18   : > { %v276_v8 = vmul.f32 %v470_v3, %v221_v7  ;;  %v222_v10 = vld [vmem:[%s204_s7 + $0x18] sm:$0xff]  ;;  %v220_v11 = vld [vmem:[%s204_s7 + $0x8] sm:$0xff]  ;;  %v274_v12 = vmul.f32 %v469_v4, %v219_v9  ;;  %v223_v17 = vld [vmem:[%s204_s7 + $0x20] sm:$0xff]  ;;  %v241_v32 = vadd.s32 8, %v240_v30  ;;  %vm244_vm0 = vcmp.eq.s32.totalorder %v240_v30, %v243_v31 }
  0x19   : > { %v277_v13 = vmul.f32 %v470_v3, %v222_v10  ;;  %v275_v14 = vmul.f32 %v469_v4, %v220_v11  ;;  %v224_v16 = vld [vmem:[%s204_s7 + $0x28] sm:$0xff]  ;;  %v235_v19 = vld [vmem:[%s670_s4 + $0x20] sm:$0xff]  ;;  %v278_v21 = vmul.f32 %v471_v15, %v223_v17  ;;  %v226_v23 = vld [vmem:[%s204_s7 + $0x38] sm:$0xff]  ;;  %v467_v34 = vsel %vm244_vm0, 1.0, %v591_v33  ;;  %p530_p12 = pnand %p529_p11, %p653_p5 }
  0x1a   : > { %v236_v18 = vld [vmem:[%s670_s4 + $0x28] sm:$0xff]  ;;  %v279_v20 = vmul.f32 %v471_v15, %v224_v16  ;;  %v472_v22 = vld [vmem:[%s209_s28 + $0x3] ss:$0 sm:$0xff]  ;;  %v225_v24 = vld [vmem:[%s204_s7 + $0x30] sm:$0xff]  ;;  %vm245_vm1 = vcmp.eq.s32.totalorder %v241_v32, %v243_v31  ;;  %v338_v37 = vmul.f32 1e-05, %v467_v34 }
  0x1b   : > { %299 = vperm.xlu1 %527, %v234_v5   ;;  %289 = vperm.xlu0 %526, %v232_v6   ;;  %v281_v25 = vmul.f32 %v472_v22, %v226_v23  ;;  %v280_v26 = vmul.f32 %v472_v22, %v225_v24  ;;  %v238_v27 = vld [vmem:[%s670_s4 + $0x38] sm:$0xff]  ;;  %v237_v28 = vld [vmem:[%s670_s4 + $0x30] sm:$0xff]  ;;  %v468_v40 = vsel %vm245_vm1, 1.0, %v591_v33  ;;  %p531_p13 = pneg %p530_p12  ;;  %s534_s28 = scalar_lea.vmem %s533_s27, 2048 }
  0x1c   : > { %v339_v43 = vmul.f32 1e-05, %v468_v40  ;;  %p536_p1 = scmp.lt.s32.totalorder %s534_s28, %s528_s25 }
  0x1e   : > { %p537_p2 = por %p536_p1, %p535_p0 }
  0x1f   : > { %309 = vperm.xlu1 %527, %v236_v18   ;;  %304 = vperm.xlu0 %526, %v235_v19  }
  0x20   : > { %p538_p3 = pnand %p537_p2, %p531_p13 }
  0x23   : > { %319 = vperm.xlu1 %527, %v238_v27   ;;  %314 = vperm.xlu0 %526, %v237_v28  }
  0x92   : > { %v295_v35 = vpop.permute.xlu1 %294  ;;  %v285_v36 = vpop.permute.xlu0 %284 }
  0x93   : > { %v324_v38 = vmul.f32 %v295_v35, %v276_v8  ;;  %v322_v39 = vmul.f32 %v285_v36, %v274_v12 }
  0x95   : > { %v332_v41 = vmul.f32 2.0, %v324_v38  ;;  %v330_v42 = vmul.f32 2.0, %v322_v39 }
  0x96   : > { %v300_v44 = vpop.permute.xlu1 %299  ;;  %v290_v45 = vpop.permute.xlu0 %289 }
  0x97   : > { %v342_v46 = vadd.f32 %v338_v37, %v332_v41  ;;  %v340_v47 = vadd.f32 %v338_v37, %v330_v42  ;;  %v325_v48 = vmul.f32 %v300_v44, %v277_v13  ;;  %v323_v49 = vmul.f32 %v290_v45, %v275_v14 }
  0x99   : > { %351 = vst.msk [vmem:[%s686_s10 + $0x10] sm:$0xff] %vm348_vm2, %v342_v46  ;;  %349 = vst.msk [vmem:[%s686_s10] sm:$0xff] %vm348_vm2, %v340_v47  ;;  %v333_v50 = vmul.f32 2.0, %v325_v48  ;;  %v331_v51 = vmul.f32 2.0, %v323_v49 }
  0x9a   : > { %v310_v52 = vpop.permute.xlu1 %309  ;;  %v305_v53 = vpop.permute.xlu0 %304 }
  0x9b   : > { %v343_v54 = vadd.f32 %v339_v43, %v333_v50  ;;  %v341_v55 = vadd.f32 %v339_v43, %v331_v51  ;;  %v327_v56 = vmul.f32 %v310_v52, %v279_v20  ;;  %v326_v57 = vmul.f32 %v305_v53, %v278_v21 }
  0x9d   : > { %352 = vst.msk [vmem:[%s686_s10 + $0x18] sm:$0xff] %vm348_vm2, %v343_v54  ;;  %350 = vst.msk [vmem:[%s686_s10 + $0x8] sm:$0xff] %vm348_vm2, %v341_v55  ;;  %v335_v58 = vmul.f32 2.0, %v327_v56  ;;  %v334_v59 = vmul.f32 2.0, %v326_v57 }
  0x9e   : > { %v320_v60 = vpop.permute.xlu1 %319  ;;  %v315_v61 = vpop.permute.xlu0 %314 }
  0x9f   : > { %v345_v62 = vadd.f32 %v339_v43, %v335_v58  ;;  %v344_v63 = vadd.f32 %v338_v37, %v334_v59  ;;  %v329_v0 = vmul.f32 %v320_v60, %v281_v25  ;;  %v328_v1 = vmul.f32 %v315_v61, %v280_v26 }
  0xa1   : > { %354 = vst.msk [vmem:[%s686_s10 + $0x28] sm:$0xff] %vm348_vm2, %v345_v62  ;;  %353 = vst.msk [vmem:[%s686_s10 + $0x20] sm:$0xff] %vm348_vm2, %v344_v63  ;;  %v337_v2 = vmul.f32 2.0, %v329_v0  ;;  %v336_v3 = vmul.f32 2.0, %v328_v1 }
  0xa3   : > { %v347_v4 = vadd.f32 %v339_v43, %v337_v2  ;;  %v346_v5 = vadd.f32 %v338_v37, %v336_v3 }
  0xa5   : > { %356 = vst.msk [vmem:[%s686_s10 + $0x38] sm:$0xff] %vm348_vm2, %v347_v4  ;;  %355 = vst.msk [vmem:[%s686_s10 + $0x30] sm:$0xff] %vm348_vm2, %v346_v5 }
  0xa6   : > { %541 = shalt.err (!%p538_p3)
}
  0xa7   : > { %s542_s29 = scalar_lea.hbm %s705_s24, 1024  ;;  %s546_s5 = scalar_lea.hbm %s758_s3, 2048 }
  0xa8   : > { %p543_p4 = scmp.ne.s32.totalorder %s705_s24, %s542_s29  ;;  %p547_p9 = scmp.lt.s32.totalorder %s705_s24, %s758_s3 }
  0xa9   : > { %p548_p10 = scmp.lt.s32.totalorder %s546_s5, %s542_s29 }
  0xaa   : > { %p544_p7 = pnand %p543_p4, %p653_p5 }
  0xab   : > { %p549_p11 = por %p548_p10, %p547_p9 }
  0xac   : > { %p545_p8 = pneg %p544_p7 }
  0xae   : > { %p550_p12 = pnand %p549_p11, %p545_p8 }
  0xb0   : > { %553 = shalt.err (!%p550_p12)
}
  0xb1   : > { %s593_s8 = smov 128   ;;  %s594_s9 = smov 8  }
  0xb2   : > { %483 = dma.vmem_to_hbm [thread:$0]  (%p653_p5), %s707_s17, 1024, %s705_s24, %s715_s16, %s593_s8, %s593_s8, %s594_s9  }
  0xb3 PF: > { %p489_p13 = scmp.ge.s32.totalorder %s588_s15, 2  ;;  %s387_s10 = sand.u32 1, %s576_s12  }
  0xb4   : > { %s388_s11 = scalar_lea.sflag [#allocation3], %s387_s10 }
  0xb5   : > { %p486_p0 = pnand %p489_p13, %p657_p6 }
  0xb7   : > { %p487_p1 = pneg %p486_p0 }
  0xb9   : > { %571 = dma.done.wait (%p487_p1), %s388_s11, 1024  }
  0xba   : > { %573 = vsyncadd (%p487_p1), %s388_s11, 4294966272  ;;  %p13_p2 = scmp.ge.s32.totalorder %s640_s18, 4   ;;  %s761_s12 = smov %s580_s13 }
  0xbb   : > { %s762_s13 = smov %s584_s14  ;;  %s763_s14 = smov %s651_s21 }
  0xbc   : > { %s764_s15 = smov %s640_s18  ;;  %15 = sbr.rel (!%p13_p2) target bundleno = 3 (0x3), region = 73 }
  0xc1   :  { %393 = vsyncpa [#allocation3], 1 }
  0xc2   :  { %395 = vsyncpa [#allocation3 + $0x1], 1 }

</bundles_post_ra>
